<compile_context>
chip_gen: v7x
topology: tpu7x:2x2x1
jax: 0.10.0
libtpu: 0.0.40
codegen_flags: <defaults>
</compile_context>

<pallas_src>
import functools

import jax
import jax.numpy as jnp
from jax import lax
from jax.experimental import pallas as pl
from jax.experimental.pallas import tpu as pltpu


def _round_up(x, m):
    return (x + m - 1) // m * m


def _pick_tile_m(m_total):
    """Row-tile size (matmul M): >= 256 and a multiple of 128, preferring at
    least two tiles so both v7x TensorCores can be fed."""
    for tm in (2048, 1024, 512, 256):
        if m_total >= 2 * tm:
            return tm
    return 256 if m_total >= 256 else 128


def _im2col_matmul_kernel(p_ref, w_ref, b_ref, o_ref):
    """One row tile of the conv-as-matmul.

    p_ref: (TM, K)  im2col patches (K = 9*C), MXU operand dtype
    w_ref: (K, C)   flattened 3x3 weights, MXU operand dtype (grid-constant)
    b_ref: (1, C)   bias, float32 (grid-constant)
    o_ref: (TM, C)  output pixels, float32
    """
    acc = jnp.dot(p_ref[...], w_ref[...], preferred_element_type=jnp.float32)
    o_ref[...] = (acc + b_ref[...]).astype(o_ref.dtype)


@functools.partial(jax.jit, static_argnames=("compute_dtype",))
def conv3x3_same_pallas(x_nchw, weight, bias, *, compute_dtype=jnp.bfloat16):
    """Conv2d(C, C, kernel=3, padding=1) forward (the wrapped module).

    x_nchw : (N, C, H, W) float32
    weight : (3, 3, C, Cout) float32  (kh, kw, cin, cout)
    bias   : (Cout,) float32
    """
    N, C, H, W = x_nchw.shape
    Cout = weight.shape[-1]
    K = 9 * C

    # --- host-side layout glue ---------------------------------------------
    # NCHW -> NHWC, zero pad, im2col patch extraction.  For small C this
    # turns the conv into one dense K=9C matmul with no 128x channel padding
    # on either the contraction or the output; the 9x input expansion is
    # cheap at C=4.
    # TODO(synk): for large C (where 9x im2col expansion costs real HBM),
    # switch to an in-kernel halo row-tile kernel with manual double-buffered
    # DMA; and accept NHWC inputs to drop the NCHW<->NHWC transposes.
    x_nhwc = jnp.transpose(x_nchw, (0, 2, 3, 1)).astype(compute_dtype)
    x_pad = jnp.pad(x_nhwc, ((0, 0), (1, 1), (1, 1), (0, 0)))
    patches = jnp.concatenate(
        [x_pad[:, kh:kh + H, kw:kw + W, :]
         for kh in range(3) for kw in range(3)],
        axis=-1)                                   # (N, H, W, 9C), order (kh,kw,cin)

    m_total = N * H * W
    tm = _pick_tile_m(m_total)
    m_pad = _round_up(m_total, tm)
    p_flat = jnp.pad(patches.reshape(m_total, K),
                     ((0, m_pad - m_total), (0, 0)))

    w_flat = weight.reshape(K, Cout).astype(compute_dtype)  # rows = (kh,kw,cin)
    b2d = bias.reshape(1, Cout).astype(jnp.float32)

    n_tiles = m_pad // tm

    # VMEM budget: double-buffered streaming blocks + single-buffered
    # grid-constant params (constant index_map -> not re-fetched per step);
    # minor dims counted as padded to the 128-lane width.
    opd = jnp.dtype(compute_dtype).itemsize
    in_block = tm * _round_up(K, 128) * opd
    out_block = tm * _round_up(Cout, 128) * 4
    param_bytes = _round_up(K, 16) * _round_up(Cout, 128) * opd + 8 * 128 * 4
    est = 2 * (in_block + out_block) + param_bytes
    vmem_limit = int(min(max(2 * est, 8 << 20), 40 << 20))  # 40 MiB: v7x headroom

    out_flat = pl.pallas_call(
        _im2col_matmul_kernel,
        out_shape=jax.ShapeDtypeStruct((m_pad, Cout), jnp.float32),
        grid=(n_tiles,),
        in_specs=[
            pl.BlockSpec((tm, K), lambda i: (i, 0)),
            pl.BlockSpec((K, Cout), lambda i: (0, 0)),   # grid-constant weights
            pl.BlockSpec((1, Cout), lambda i: (0, 0)),   # grid-constant bias
        ],
        out_specs=pl.BlockSpec((tm, Cout), lambda i: (i, 0)),
        compiler_params=pltpu.CompilerParams(
            dimension_semantics=("parallel",),
            vmem_limit_bytes=vmem_limit,
        ),
    )(p_flat, w_flat, b2d)

    out_nhwc = out_flat[:m_total].reshape(N, H, W, Cout)
    return jnp.transpose(out_nhwc, (0, 3, 1, 2))


class WeightDecayConv2d:
    """JAX analogue of WeightDecay(Conv2d(C, C, 3, padding=1), weight_decay).

    Forward is a pure pass-through to the wrapped module, exactly like
    WeightDecay.forward in the PyTorch spec; weight_decay only touches
    parameter gradients.
    """

    def __init__(self, weight, bias, weight_decay, name=None,
                 compute_dtype=jnp.bfloat16):
        if weight_decay <= 0.0:
            raise ValueError(
                "Regularization's weight_decay should be greater than 0.0, "
                "got {}".format(weight_decay))
        self.weight = weight
        self.bias = bias
        self.weight_decay = weight_decay
        self.name = name
        self.compute_dtype = compute_dtype
        # TODO(synk): the torch backward hook (param.grad = regularize(param))
        # is gradient-side only and has no forward-pass Pallas equivalent; it
        # would be wired via jax.custom_vjp if gradients were ever needed.

    def regularize(self, parameter):
        # L2 example of the abstract regularize(); unused in the forward pass.
        return self.weight_decay * parameter

    def __call__(self, x_nchw):
        return conv3x3_same_pallas(x_nchw, self.weight, self.bias,
                                   compute_dtype=self.compute_dtype)


if __name__ == "__main__":
    key = jax.random.PRNGKey(0)
    kx, kw, kb = jax.random.split(key, 3)

    N, C, H, W = 2, 4, 16, 16

    x = jax.random.normal(kx, (N, C, H, W), dtype=jnp.float32)
    weight = jax.random.normal(kw, (3, 3, C, C), dtype=jnp.float32) * 0.1
    bias = jax.random.normal(kb, (C,), dtype=jnp.float32) * 0.01

    mod = WeightDecayConv2d(weight, bias, weight_decay=1e-4)
    out = jax.block_until_ready(mod(x))

    # Pure-JAX reference: forward of the wrapped module (3x3 same conv + bias)
    # with the same bf16 MXU operands / f32 accumulation as the kernel.
    ref = lax.conv_general_dilated(
        x.astype(jnp.bfloat16),
        jnp.transpose(weight, (3, 2, 0, 1)).astype(jnp.bfloat16),  # OIHW
        window_strides=(1, 1), padding="SAME",
        dimension_numbers=("NCHW", "OIHW", "NCHW"),
        preferred_element_type=jnp.float32,
    ) + bias.reshape(1, C, 1, 1)

    assert out.shape == x.shape and out.dtype == jnp.float32
    err = float(jnp.max(jnp.abs(out - ref)))
    assert err < 1e-3, err
    print("KERNEL_OK")
</pallas_src>

<mosaic_0001>
module attributes {stable_mosaic.version = 11 : i64} {
  func.func @_im2col_matmul_kernel(%arg0: i32, %arg1: memref<256x36xbf16, #tpu.memory_space<vmem>>, %arg2: memref<36x4xbf16, #tpu.memory_space<vmem>>, %arg3: memref<1x4xf32, #tpu.memory_space<vmem>>, %arg4: memref<256x4xf32, #tpu.memory_space<vmem>>) attributes {dimension_semantics = [#tpu.dimension_semantics<parallel>], iteration_bounds = array<i64: 2>, scalar_prefetch = 0 : i64, scratch_operands = 0 : i64, tpu.core_type = #tpu.core_type<tc>, window_params = [{transform_indices = @transform_0, window_bounds = array<i64: 256, 36>}, {pipeline_mode = #tpu.pipeline_mode<synchronous>, transform_indices = @transform_1, window_bounds = array<i64: 36, 4>}, {pipeline_mode = #tpu.pipeline_mode<synchronous>, transform_indices = @transform_2, window_bounds = array<i64: 1, 4>}, {transform_indices = @transform_3, window_bounds = array<i64: 256, 4>}]} {
    %c0 = arith.constant 0 : index
    %c0_0 = arith.constant 0 : index
    %0 = vector.load %arg1[%c0, %c0_0] : memref<256x36xbf16, #tpu.memory_space<vmem>>, vector<256x36xbf16>
    %c0_1 = arith.constant 0 : index
    %c0_2 = arith.constant 0 : index
    %1 = vector.load %arg2[%c0_1, %c0_2] : memref<36x4xbf16, #tpu.memory_space<vmem>>, vector<36x4xbf16>
    %cst = arith.constant dense<0.000000e+00> : vector<256x4xf32>
    %2 = tpu.matmul %0, %1, %cst {dimension_numbers = #tpu.dot_dimension_numbers<[1], [0], [0], [1], [0, 0, 1, 1], [], []>} : vector<256x36xbf16>, vector<36x4xbf16>, vector<256x4xf32> -> vector<256x4xf32>
    %c0_3 = arith.constant 0 : index
    %c0_4 = arith.constant 0 : index
    %3 = vector.load %arg3[%c0_3, %c0_4] : memref<1x4xf32, #tpu.memory_space<vmem>>, vector<1x4xf32>
    %4 = vector.broadcast %3 : vector<1x4xf32> to vector<256x4xf32>
    %5 = arith.addf %2, %4 : vector<256x4xf32>
    %c0_5 = arith.constant 0 : index
    %c0_6 = arith.constant 0 : index
    %6 = vector.load %arg4[%c0_5, %c0_6] : memref<256x4xf32, #tpu.memory_space<vmem>>, vector<256x4xf32>
    tpu.vector_store %arg4[%c0_5, %c0_6], %5 {strides = array<i32>} : memref<256x4xf32, #tpu.memory_space<vmem>>, vector<256x4xf32>,
    return
  }
  func.func @transform_0(%arg0: i32) -> (i32, i32) {
    %c0_i32 = arith.constant 0 : i32
    %c0_i32_0 = arith.constant 0 : i32
    return %arg0, %c0_i32 : i32, i32
  }
  func.func @transform_1(%arg0: i32) -> (i32, i32) {
    %c0_i32 = arith.constant 0 : i32
    %c0_i32_0 = arith.constant 0 : i32
    %c0_i32_1 = arith.constant 0 : i32
    return %c0_i32, %c0_i32_0 : i32, i32
  }
  func.func @transform_2(%arg0: i32) -> (i32, i32) {
    %c0_i32 = arith.constant 0 : i32
    %c0_i32_0 = arith.constant 0 : i32
    %c0_i32_1 = arith.constant 0 : i32
    return %c0_i32, %c0_i32_0 : i32, i32
  }
  func.func @transform_3(%arg0: i32) -> (i32, i32) {
    %c0_i32 = arith.constant 0 : i32
    %c0_i32_0 = arith.constant 0 : i32
    return %arg0, %c0_i32 : i32, i32
  }
}

</mosaic_0001>

<bundles_post_ra>
// kernel: conv3x3_same_pallas.1
= control target key start
LH: loop header
LB: loop body
LE: loop exit
PB: predicated region body
PF: predicated region fallthrough
CT: control target
= control target key end

     0   :  { %s784_s12 = smov 0   ;;  %s951_s0 = inlined_call_operand.vmem [shape: bf16[512,36], index: 0, kind: input, shape index: {}]   ;;  %s952_s1 = inlined_call_operand.vmem [shape: bf16[36,4], index: 1, kind: input, shape index: {}]   ;;  %s953_s2 = inlined_call_operand.vmem [shape: f32[1,4], index: 2, kind: input, shape index: {}]   ;;  %s954_s3 = inlined_call_operand.vmem [shape: f32[512,4], index: 3, kind: output, shape index: {}]  }
   0x1 LB: > { %s617_s13 = sadd.s32 4294967295, %s762_s12   ;;  %p621_p0 = scmp.ge.s32.totalorder %s762_s12, 1  ;;  %s762_s12 = sphi %s784_s12, %s13_s12  }
   0x2   : > { %p138_p1 = scmp.lt.s32.totalorder %s762_s12, 3 }
   0x4   : > { %p139_p2 = pnand %p621_p0, %p138_p1 }
   0x5   : > { %v737_v0 = vld [vmem:[%s952_s1] sm:$0xff] (!%p139_p2)   ;;  %v738_v1 = vld [vmem:[%s952_s1 + $0x8] sm:$0xff] (!%p139_p2)   ;;  %s622_s18 = sshll.u32 (!%p139_p2), %s617_s13, 5  ;;  %v739_v2 = vld [vmem:[%s952_s1 + $0x10] ss:$0 sps:$4 sm:$0x33] (!%p139_p2)  }
   0x6   : > { %142 = sbr.rel (%p139_p2) target bundleno = 261 (0x105), region = 32  ;;  %683 = vmatprep.subr.bf16.mxu0 (!%p139_p2), %v737_v0  ;;  %721 = vmatprep.subr.bf16.mxu1 (!%p139_p2), %v737_v0  ;;  %p163_p3 = scmp.lt.s32.totalorder (!%p139_p2), %s622_s18, 63  ;;  %vm363_vm0 = vcmask (!%p139_p2), 1041408   ;;  %vm314_vm1 = vcmask (!%p139_p2), 293888   ;;  %v845_v20 = vld [vmem:[%s953_s2] ss:$0 sm:$0xff] (!%p139_p2) }
   0x7   : > { %684 = vmatpush3.bf16.msra.mxu0 (!%p139_p2), %v737_v0  ;;  %724 = vmatpush3.bf16.msra.mxu1 (!%p139_p2), %v737_v0  ;;  %v365_v3 = vsel (!%p139_p2), %vm363_vm0, %v739_v2, 0  ;;  %vm528_vm2 = vcmask (!%p139_p2), 31744  }
   0x8   : > { %685 = vmatprep.subr.bf16.mxu0 (!%p139_p2), %v738_v1  ;;  %722 = vmatprep.subr.bf16.mxu1 (!%p139_p2), %v738_v1 }
   0xb   : > { %686 = vmatpush3.bf16.msra.mxu0 (!%p139_p2), %v738_v1  ;;  %725 = vmatpush3.bf16.msra.mxu1 (!%p139_p2), %v738_v1 }
   0xc   : > { %727 = vmatprep.subr.msk.bf16.mxu0 (!%p139_p2), %vm363_vm0, %v739_v2  ;;  %728 = vmatprep.subr.msk.bf16.mxu1 (!%p139_p2), %vm363_vm0, %v739_v2 }
   0xd   : > { %s956_s18 = smov (!%p163_p3, %s622_s18), 63 }
   0xe   : > { %s623_s21 = sshll.u32 %s956_s18, 2  ;;  %s625_s25 = sshll.u32 %s956_s18, 3 }
   0xf   : > { %s807_s24 = scalar_lea.vmem %s951_s0, %s623_s21  ;;  %688 = vmatpush3.bf16.msra.mxu0 %v365_v3  ;;  %726 = vmatpush3.bf16.msra.mxu1 %v365_v3  ;;  %s850_s30 = scalar_lea.vmem %s954_s3, %s625_s25 }
  0x10   : > { %v740_v4 = vld [vmem:[%s807_s24] sm:$0xff]   ;;  %v742_v6 = vld [vmem:[%s807_s24 + $0x8] sm:$0xff]   ;;  %v744_v8 = vld [vmem:[%s807_s24 + $0x10] sm:$0xff]  }
  0x11   : > { %v741_v5 = vld [vmem:[%s807_s24 + $0x40] sm:$0xff]   ;;  %689 = vmatprep.mubr.msk.bf16.mxu0 %vm314_vm1, %v740_v4  ;;  %v743_v7 = vld [vmem:[%s807_s24 + $0x48] sm:$0xff]   ;;  %v745_v9 = vld [vmem:[%s807_s24 + $0x50] sm:$0xff]  }
  0x12   : > { %705 = vmatprep.mubr.msk.bf16.mxu1 %vm314_vm1, %v741_v5  ;;  %690 = vmatmul.mubr.msk.bf16.vlgmr.msra.gmra.mrb[0].mxu0 %vm314_vm1, %v742_v6  ;;  %v746_v10 = vld [vmem:[%s807_s24 + $0x18] sm:$0xff]   ;;  %v748_v12 = vld [vmem:[%s807_s24 + $0x20] sm:$0xff]   ;;  %v750_v14 = vld [vmem:[%s807_s24 + $0x28] sm:$0xff]  }
  0x13   : > { %706 = vmatmul.mubr.msk.bf16.vlgmr.msra.gmra.mrb[0].mxu1 %vm314_vm1, %v743_v7  ;;  %693 = vmatprep.mubr.msk.bf16.mxu0 %vm314_vm1, %v744_v8  ;;  %v747_v11 = vld [vmem:[%s807_s24 + $0x58] sm:$0xff]   ;;  %v749_v13 = vld [vmem:[%s807_s24 + $0x60] sm:$0xff]   ;;  %v751_v15 = vld [vmem:[%s807_s24 + $0x68] sm:$0xff]  }
  0x14   : > { %709 = vmatprep.mubr.msk.bf16.mxu1 %vm314_vm1, %v745_v9  ;;  %v752_v16 = vld [vmem:[%s807_s24 + $0x30] sm:$0xff]   ;;  %v754_v18 = vld [vmem:[%s807_s24 + $0x38] sm:$0xff]  }
  0x15   : > { %v753_v17 = vld [vmem:[%s807_s24 + $0x70] sm:$0xff]   ;;  %v755_v19 = vld [vmem:[%s807_s24 + $0x78] sm:$0xff]  }
  0x1a   : > { %694 = vmatmul.mubr.msk.bf16.gmra.mrb[4].mxu0 %vm314_vm1, %v746_v10 }
  0x1b   : > { %710 = vmatmul.mubr.msk.bf16.gmra.mrb[4].mxu1 %vm314_vm1, %v747_v11  ;;  %697 = vmatprep.mubr.msk.bf16.mxu0 %vm314_vm1, %v748_v12 }
  0x1c   : > { %713 = vmatprep.mubr.msk.bf16.mxu1 %vm314_vm1, %v749_v13 }
  0x22   : > { %698 = vmatmul.mubr.msk.bf16.gmra.mrb[8].mxu0 %vm314_vm1, %v750_v14 }
  0x23   : > { %714 = vmatmul.mubr.msk.bf16.gmra.mrb[8].mxu1 %vm314_vm1, %v751_v15  ;;  %701 = vmatprep.mubr.msk.bf16.mxu0 %vm314_vm1, %v752_v16 }
  0x24   : > { %717 = vmatprep.mubr.msk.bf16.mxu1 %vm314_vm1, %v753_v17 }
  0x2a   : > { %702 = vmatmul.mubr.msk.bf16.gmra.mrb[12].mxu0 %vm314_vm1, %v754_v18 }
  0x2b   : > { %718 = vmatmul.mubr.msk.bf16.gmra.mrb[12].mxu1 %vm314_vm1, %v755_v19 }
  0xe5   : > { %v691_v21 = vpop.f32.mrb[0].mxu0 }
  0xe6   : > { %v707_v22 = vpop.f32.mrb[0].mxu1  ;;  %v410_v23 = vadd.f32 %v691_v21, %v845_v20  ;;  %v401_v25 = vpop.f32.mrb[1].mxu0 }
  0xe7   : > { %v474_v24 = vadd.f32 %v707_v22, %v845_v20  ;;  %v465_v26 = vpop.f32.mrb[1].mxu1  ;;  %v402_v27 = vadd.f32 %v845_v20, %v401_v25  ;;  %v692_v29 = vpop.f32.mrb[2].mxu0 }
  0xe8   : > { %v466_v28 = vadd.f32 %v845_v20, %v465_v26  ;;  %v708_v30 = vpop.f32.mrb[2].mxu1  ;;  %531 = vst.msk [vmem:[%s850_s30 + $0x10] sm:$0xff] %vm528_vm2, %v410_v23  ;;  %v413_v31 = vadd.f32 %v692_v29, %v845_v20  ;;  %v404_v33 = vpop.f32.mrb[3].mxu0 }
  0xe9   : > { %547 = vst.msk [vmem:[%s850_s30 + $0x90] sm:$0xff] %vm528_vm2, %v474_v24  ;;  %v477_v32 = vadd.f32 %v708_v30, %v845_v20  ;;  %v468_v34 = vpop.f32.mrb[3].mxu1  ;;  %529 = vst.msk [vmem:[%s850_s30] sm:$0xff] %vm528_vm2, %v402_v27  ;;  %v405_v35 = vadd.f32 %v845_v20, %v404_v33 }
  0xea   : > { %545 = vst.msk [vmem:[%s850_s30 + $0x80] sm:$0xff] %vm528_vm2, %v466_v28  ;;  %v469_v36 = vadd.f32 %v845_v20, %v468_v34  ;;  %532 = vst.msk [vmem:[%s850_s30 + $0x18] sm:$0xff] %vm528_vm2, %v413_v31 }
  0xeb   : > { %548 = vst.msk [vmem:[%s850_s30 + $0x98] sm:$0xff] %vm528_vm2, %v477_v32  ;;  %530 = vst.msk [vmem:[%s850_s30 + $0x8] sm:$0xff] %vm528_vm2, %v405_v35 }
  0xec   : > { %546 = vst.msk [vmem:[%s850_s30 + $0x88] sm:$0xff] %vm528_vm2, %v469_v36 }
  0xed   : > { %v695_v37 = vpop.f32.mrb[4].mxu0 }
  0xee   : > { %v711_v38 = vpop.f32.mrb[4].mxu1  ;;  %v426_v39 = vadd.f32 %v695_v37, %v845_v20  ;;  %v417_v41 = vpop.f32.mrb[5].mxu0 }
  0xef   : > { %v490_v40 = vadd.f32 %v711_v38, %v845_v20  ;;  %v481_v42 = vpop.f32.mrb[5].mxu1  ;;  %v418_v43 = vadd.f32 %v845_v20, %v417_v41  ;;  %v696_v45 = vpop.f32.mrb[6].mxu0 }
  0xf0   : > { %v482_v44 = vadd.f32 %v845_v20, %v481_v42  ;;  %v712_v46 = vpop.f32.mrb[6].mxu1  ;;  %535 = vst.msk [vmem:[%s850_s30 + $0x30] sm:$0xff] %vm528_vm2, %v426_v39  ;;  %v429_v47 = vadd.f32 %v696_v45, %v845_v20  ;;  %v420_v49 = vpop.f32.mrb[7].mxu0 }
  0xf1   : > { %551 = vst.msk [vmem:[%s850_s30 + $0xb0] sm:$0xff] %vm528_vm2, %v490_v40  ;;  %v493_v48 = vadd.f32 %v712_v46, %v845_v20  ;;  %v484_v50 = vpop.f32.mrb[7].mxu1  ;;  %533 = vst.msk [vmem:[%s850_s30 + $0x20] sm:$0xff] %vm528_vm2, %v418_v43  ;;  %v421_v51 = vadd.f32 %v845_v20, %v420_v49 }
  0xf2   : > { %549 = vst.msk [vmem:[%s850_s30 + $0xa0] sm:$0xff] %vm528_vm2, %v482_v44  ;;  %v485_v52 = vadd.f32 %v845_v20, %v484_v50  ;;  %536 = vst.msk [vmem:[%s850_s30 + $0x38] sm:$0xff] %vm528_vm2, %v429_v47 }
  0xf3   : > { %552 = vst.msk [vmem:[%s850_s30 + $0xb8] sm:$0xff] %vm528_vm2, %v493_v48  ;;  %534 = vst.msk [vmem:[%s850_s30 + $0x28] sm:$0xff] %vm528_vm2, %v421_v51 }
  0xf4   : > { %550 = vst.msk [vmem:[%s850_s30 + $0xa8] sm:$0xff] %vm528_vm2, %v485_v52 }
  0xf5   : > { %v699_v53 = vpop.f32.mrb[8].mxu0 }
  0xf6   : > { %v715_v54 = vpop.f32.mrb[8].mxu1  ;;  %v442_v55 = vadd.f32 %v699_v53, %v845_v20  ;;  %v433_v57 = vpop.f32.mrb[9].mxu0 }
  0xf7   : > { %v506_v56 = vadd.f32 %v715_v54, %v845_v20  ;;  %v497_v58 = vpop.f32.mrb[9].mxu1  ;;  %v434_v59 = vadd.f32 %v845_v20, %v433_v57  ;;  %v700_v61 = vpop.f32.mrb[10].mxu0 }
  0xf8   : > { %v498_v60 = vadd.f32 %v845_v20, %v497_v58  ;;  %v716_v62 = vpop.f32.mrb[10].mxu1  ;;  %539 = vst.msk [vmem:[%s850_s30 + $0x50] sm:$0xff] %vm528_vm2, %v442_v55  ;;  %v445_v63 = vadd.f32 %v700_v61, %v845_v20  ;;  %v436_v1 = vpop.f32.mrb[11].mxu0 }
  0xf9   : > { %555 = vst.msk [vmem:[%s850_s30 + $0xd0] sm:$0xff] %vm528_vm2, %v506_v56  ;;  %v509_v0 = vadd.f32 %v716_v62, %v845_v20  ;;  %v500_v2 = vpop.f32.mrb[11].mxu1  ;;  %537 = vst.msk [vmem:[%s850_s30 + $0x40] sm:$0xff] %vm528_vm2, %v434_v59  ;;  %v437_v3 = vadd.f32 %v845_v20, %v436_v1 }
  0xfa   : > { %553 = vst.msk [vmem:[%s850_s30 + $0xc0] sm:$0xff] %vm528_vm2, %v498_v60  ;;  %v501_v4 = vadd.f32 %v845_v20, %v500_v2  ;;  %540 = vst.msk [vmem:[%s850_s30 + $0x58] sm:$0xff] %vm528_vm2, %v445_v63 }
  0xfb   : > { %556 = vst.msk [vmem:[%s850_s30 + $0xd8] sm:$0xff] %vm528_vm2, %v509_v0  ;;  %538 = vst.msk [vmem:[%s850_s30 + $0x48] sm:$0xff] %vm528_vm2, %v437_v3 }
  0xfc   : > { %554 = vst.msk [vmem:[%s850_s30 + $0xc8] sm:$0xff] %vm528_vm2, %v501_v4 }
  0xfd   : > { %v703_v5 = vpop.f32.mrb[12].mxu0 }
  0xfe   : > { %v719_v6 = vpop.f32.mrb[12].mxu1  ;;  %v458_v7 = vadd.f32 %v703_v5, %v845_v20  ;;  %v449_v9 = vpop.f32.mrb[13].mxu0 }
  0xff   : > { %v522_v8 = vadd.f32 %v719_v6, %v845_v20  ;;  %v513_v10 = vpop.f32.mrb[13].mxu1  ;;  %v450_v11 = vadd.f32 %v845_v20, %v449_v9  ;;  %v704_v13 = vpop.f32.mrb[14].mxu0 }
 0x100   : > { %v514_v12 = vadd.f32 %v845_v20, %v513_v10  ;;  %v720_v14 = vpop.f32.mrb[14].mxu1  ;;  %543 = vst.msk [vmem:[%s850_s30 + $0x70] sm:$0xff] %vm528_vm2, %v458_v7  ;;  %v461_v15 = vadd.f32 %v704_v13, %v845_v20  ;;  %v452_v17 = vpop.f32.mrb[15].mxu0 }
 0x101   : > { %559 = vst.msk [vmem:[%s850_s30 + $0xf0] sm:$0xff] %vm528_vm2, %v522_v8  ;;  %v525_v16 = vadd.f32 %v720_v14, %v845_v20  ;;  %v516_v18 = vpop.f32.mrb[15].mxu1  ;;  %541 = vst.msk [vmem:[%s850_s30 + $0x60] sm:$0xff] %vm528_vm2, %v450_v11  ;;  %v453_v19 = vadd.f32 %v845_v20, %v452_v17 }
 0x102   : > { %557 = vst.msk [vmem:[%s850_s30 + $0xe0] sm:$0xff] %vm528_vm2, %v514_v12  ;;  %v517_v21 = vadd.f32 %v845_v20, %v516_v18  ;;  %544 = vst.msk [vmem:[%s850_s30 + $0x78] sm:$0xff] %vm528_vm2, %v461_v15 }
 0x103   : > { %560 = vst.msk [vmem:[%s850_s30 + $0xf8] sm:$0xff] %vm528_vm2, %v525_v16  ;;  %542 = vst.msk [vmem:[%s850_s30 + $0x68] sm:$0xff] %vm528_vm2, %v453_v19 }
 0x104   : > { %558 = vst.msk [vmem:[%s850_s30 + $0xe8] sm:$0xff] %vm528_vm2, %v517_v21 }
 0x105 PF: > { %s13_s12 = sadd.s32 1, %s762_s12  }
 0x106   : > { %p10_p4 = scmp.ge.s32.totalorder %s13_s12, 4  }
 0x108   :  { %12 = sbr.rel (!%p10_p4) target bundleno = 1 (0x1), region = 62 }

</bundles_post_ra>
